<compile_context>
chip_gen: v6e
topology: v6e:2x2x1
jax: 0.10.0
libtpu: 0.0.40
codegen_flags: <defaults>
</compile_context>

<pallas_src>
import math
import numpy as np
import jax
import jax.numpy as jnp
from jax.experimental import pallas as pl
from jax.experimental.pallas import tpu as pltpu


# ---------------------------------------------------------------------------
# model config (small, consistent with the module)
# ---------------------------------------------------------------------------
B = 2                      # batch
N = 8                      # sequence length (tokens)
C = 32                     # dim
NUM_HEADS = 4
HEAD_DIM = C // NUM_HEADS
MLP_RATIO = 4.0
MLP_HIDDEN = int(C * MLP_RATIO)     # 128
INIT_VALUES = 0.1
SCALE = HEAD_DIM ** (-0.5)
LN_EPS = 1e-5

BN = B * N                          # flattened token rows
G = NUM_HEADS * B                   # merged (head, batch) einsum batch dim
PAD_W = 128                         # lane-padded width of each fused-weight half
VEC_ROWS = 16                       # padded rows of the fused param slab
VEC_COLS = 128                      # padded lane width (>= max(3C, MLP_HIDDEN))

# row indices inside the fused parameter slab
(R_LN1_G, R_LN1_B, R_QKV_B, R_PROJ_B, R_G1,
 R_LN2_G, R_LN2_B, R_FC1_B, R_FC2_B, R_G2) = range(10)


# ---------------------------------------------------------------------------
# kernel helpers
# ---------------------------------------------------------------------------
def _layernorm(x, g, b):
    mu = jnp.mean(x, axis=-1, keepdims=True)
    var = jnp.mean((x - mu) ** 2, axis=-1, keepdims=True)
    return (x - mu) * jax.lax.rsqrt(var + LN_EPS) * g + b


def _gelu_exact(x):
    # nn.GELU default = exact erf form (kept exact to match PyTorch numerics).
    # TODO(synk): tanh-approx GELU would move this fully onto the EUP but changes numerics.
    return 0.5 * x * (1.0 + jax.lax.erf(x * (1.0 / math.sqrt(2.0))))


# ---------------------------------------------------------------------------
# kernel
# ---------------------------------------------------------------------------
def block_kernel(x_ref, wslab_ref, fc2_wt_ref, proj_wh_ref, vec_ref, out_ref):
    x = x_ref[...]                                   # (BN, C)
    vec = vec_ref[...]                               # (VEC_ROWS, VEC_COLS) fused params

    ln1_g = vec[R_LN1_G:R_LN1_G + 1, :C]
    ln1_b = vec[R_LN1_B:R_LN1_B + 1, :C]
    qkv_b_pad = vec[R_QKV_B:R_QKV_B + 1, :]          # full 128 lanes (zeros past 3C)
    proj_b = vec[R_PROJ_B:R_PROJ_B + 1, :C]
    gamma1 = vec[R_G1:R_G1 + 1, :C]
    ln2_g = vec[R_LN2_G:R_LN2_G + 1, :C]
    ln2_b = vec[R_LN2_B:R_LN2_B + 1, :C]
    fc1_b = vec[R_FC1_B:R_FC1_B + 1, :MLP_HIDDEN]
    fc2_b = vec[R_FC2_B:R_FC2_B + 1, :C]
    gamma2 = vec[R_G2:R_G2 + 1, :C]

    # ----- attention branch -----
    h = _layernorm(x, ln1_g, ln1_b)                                    # (BN, C)
    # fused weight slab: [0] = (scaled, padded) qkv weight, [1] = fc1 weight
    qkv = jnp.dot(h, wslab_ref[0],
                  preferred_element_type=jnp.float32) + qkv_b_pad      # (BN, 128)

    # Regroup heads into one merged leading batch dim g = head*B + b.
    # Only lane slices + leading-dim reshapes/concats (no lane concatenate).
    qs, ks, vs = [], [], []
    for hd in range(NUM_HEADS):
        lo = hd * HEAD_DIM
        qs.append(qkv[:, 0 * C + lo:0 * C + lo + HEAD_DIM].reshape(B, N, HEAD_DIM))
        ks.append(qkv[:, 1 * C + lo:1 * C + lo + HEAD_DIM].reshape(B, N, HEAD_DIM))
        vs.append(qkv[:, 2 * C + lo:2 * C + lo + HEAD_DIM].reshape(B, N, HEAD_DIM))
    qg = jnp.concatenate(qs, axis=0)                                   # (G, N, D), scale pre-folded
    kg = jnp.concatenate(ks, axis=0)                                   # (G, N, D)
    vg = jnp.concatenate(vs, axis=0)                                   # (G, N, D)

    # head-batched attention: one einsum for scores, one for attn @ v
    s = jnp.einsum('gnd,gmd->gnm', qg, kg,
                   preferred_element_type=jnp.float32)                 # (G, N, N)
    s = s - jnp.max(s, axis=-1, keepdims=True)
    p = jnp.exp(s)
    p = p * pl.reciprocal(jnp.sum(p, axis=-1, keepdims=True), approx=True)

    og = jnp.einsum('gnm,gmd->gnd', p, vg,
                    preferred_element_type=jnp.float32)                # (G, N, D)

    # per-head output projection (== concat(head outputs) @ W_proj^T with the
    # proj weight pre-split per head on the host), summed over heads.
    og_h = og.reshape(NUM_HEADS, BN, HEAD_DIM)                         # leading-dim reshape only
    ph = jnp.einsum('hmd,hdc->hmc', og_h, proj_wh_ref[...],
                    preferred_element_type=jnp.float32)                # (H, BN, C)
    attn_out = jnp.sum(ph, axis=0) + proj_b                            # (BN, C)

    x = x + gamma1 * attn_out                                          # residual 1

    # ----- MLP branch -----
    h2 = _layernorm(x, ln2_g, ln2_b)
    h2 = jnp.dot(h2, wslab_ref[1],
                 preferred_element_type=jnp.float32) + fc1_b           # (BN, H)
    h2 = _gelu_exact(h2)
    h2 = jnp.dot(h2, fc2_wt_ref[...],
                 preferred_element_type=jnp.float32) + fc2_b           # (BN, C)

    out_ref[...] = x + gamma2 * h2                                     # residual 2


# ---------------------------------------------------------------------------
# wrapper
# ---------------------------------------------------------------------------
def block_forward(x, params):
    (ln1_g, ln1_b, qkv_w, qkv_b, proj_w, proj_b, gamma1,
     ln2_g, ln2_b, fc1_w, fc1_b, fc2_w, fc2_b, gamma2) = params

    # One-time host-side weight layout prep (no in-kernel transposes).
    qkv_wt = qkv_w.T                                  # (C, 3C)
    # fold the softmax scale into the q columns of the qkv weight and bias
    scale_cols = jnp.concatenate([jnp.full((C,), SCALE, jnp.float32),
                                  jnp.ones((2 * C,), jnp.float32)])
    qkv_wt = qkv_wt * scale_cols[None, :]
    qkv_b_scaled = qkv_b.reshape(-1) * scale_cols     # (3C,)

    fc1_wt = fc1_w.T                                  # (C, H)   = (32, 128)
    fc2_wt = fc2_w.T                                  # (H, C)   = (128, 32)
    proj_wh = proj_w.T.reshape(NUM_HEADS, HEAD_DIM, C)  # (H, D, C) per-head proj weight

    # fused, lane-padded weight slab: one DMA for qkv + fc1 weights
    qkv_wt_pad = jnp.pad(qkv_wt, ((0, 0), (0, PAD_W - 3 * C)))
    wslab = jnp.stack([qkv_wt_pad, fc1_wt], axis=0)   # (2, C, 128)

    # Fuse all small bias / gamma vectors into a single lane-padded slab.
    def _row(v):
        v = v.reshape(-1)
        return jnp.pad(v, (0, VEC_COLS - v.shape[0]))

    rows = [_row(ln1_g), _row(ln1_b), _row(qkv_b_scaled), _row(proj_b), _row(gamma1),
            _row(ln2_g), _row(ln2_b), _row(fc1_b), _row(fc2_b), _row(gamma2)]
    rows += [jnp.zeros((VEC_COLS,), jnp.float32)] * (VEC_ROWS - len(rows))
    vec_slab = jnp.stack(rows, axis=0)                # (16, 128)

    x2d = x.reshape(BN, C)

    def full(shape):
        nd = len(shape)
        return pl.BlockSpec(shape, lambda i, _nd=nd: (0,) * _nd)

    out2d = pl.pallas_call(
        block_kernel,
        out_shape=jax.ShapeDtypeStruct((BN, C), jnp.float32),
        grid=(1,),                                     # single invocation, whole batch fused
        in_specs=[
            full((BN, C)),                             # x (flattened tokens)
            full((2, C, PAD_W)),                       # fused qkv | fc1 weight slab
            full((MLP_HIDDEN, C)),                     # fc2 weight (pre-transposed)
            full((NUM_HEADS, HEAD_DIM, C)),            # per-head proj weights
            full((VEC_ROWS, VEC_COLS)),                # fused bias/gamma slab
        ],
        out_specs=full((BN, C)),
        compiler_params=pltpu.CompilerParams(
            dimension_semantics=("arbitrary",)),
    )(x2d, wslab, fc2_wt, proj_wh, vec_slab)

    return out2d.reshape(B, N, C)


# ---------------------------------------------------------------------------
# pure-JAX reference (mirrors the PyTorch forward)
# ---------------------------------------------------------------------------
def block_reference(x, params):
    (ln1_g, ln1_b, qkv_w, qkv_b, proj_w, proj_b, gamma1,
     ln2_g, ln2_b, fc1_w, fc1_b, fc2_w, fc2_b, gamma2) = params

    def ln(z, g, b):
        mu = jnp.mean(z, axis=-1, keepdims=True)
        var = jnp.mean((z - mu) ** 2, axis=-1, keepdims=True)
        return (z - mu) / jnp.sqrt(var + LN_EPS) * g + b

    h = ln(x, ln1_g[0], ln1_b[0])
    qkv = h @ qkv_w.T + qkv_b[0]                                 # (B, N, 3C)
    qkv = qkv.reshape(B, N, 3, NUM_HEADS, HEAD_DIM).transpose(2, 0, 3, 1, 4)
    q, k, v = qkv[0], qkv[1], qkv[2]                             # (B, H, N, D)
    attn = (q * SCALE) @ jnp.swapaxes(k, -2, -1)                 # (B, H, N, N)
    attn = jax.nn.softmax(attn, axis=-1)
    a = (attn @ v).transpose(0, 2, 1, 3).reshape(B, N, C)
    a = a @ proj_w.T + proj_b[0]
    x = x + gamma1[0] * a

    h2 = ln(x, ln2_g[0], ln2_b[0])
    h2 = h2 @ fc1_w.T + fc1_b[0]
    h2 = 0.5 * h2 * (1.0 + jax.lax.erf(h2 / math.sqrt(2.0)))
    h2 = h2 @ fc2_w.T + fc2_b[0]
    return x + gamma2[0] * h2


# ---------------------------------------------------------------------------
# main
# ---------------------------------------------------------------------------
if __name__ == "__main__":
    key = jax.random.PRNGKey(0)
    ks = jax.random.split(key, 12)

    x = jax.random.normal(ks[0], (B, N, C), dtype=jnp.float32)

    # deterministic synthetic parameters (shapes per the module __init__)
    ln1_g = jnp.ones((1, C), jnp.float32)
    ln1_b = jnp.zeros((1, C), jnp.float32)
    qkv_w = jax.random.normal(ks[1], (3 * C, C), jnp.float32) * 0.05
    # qkv_bias=True: bias = cat(q_bias, zeros, v_bias)
    q_bias = jax.random.normal(ks[2], (C,), jnp.float32) * 0.02
    v_bias = jax.random.normal(ks[3], (C,), jnp.float32) * 0.02
    qkv_b = jnp.concatenate([q_bias, jnp.zeros((C,), jnp.float32), v_bias])[None, :]
    proj_w = jax.random.normal(ks[4], (C, C), jnp.float32) * 0.05
    proj_b = (jax.random.normal(ks[5], (C,), jnp.float32) * 0.02)[None, :]
    gamma1 = jnp.full((1, C), INIT_VALUES, jnp.float32)
    ln2_g = jnp.ones((1, C), jnp.float32)
    ln2_b = jnp.zeros((1, C), jnp.float32)
    fc1_w = jax.random.normal(ks[6], (MLP_HIDDEN, C), jnp.float32) * 0.05
    fc1_b = (jax.random.normal(ks[7], (MLP_HIDDEN,), jnp.float32) * 0.02)[None, :]
    fc2_w = jax.random.normal(ks[8], (C, MLP_HIDDEN), jnp.float32) * 0.05
    fc2_b = (jax.random.normal(ks[9], (C,), jnp.float32) * 0.02)[None, :]
    gamma2 = jnp.full((1, C), INIT_VALUES, jnp.float32)

    params = (ln1_g, ln1_b, qkv_w, qkv_b, proj_w, proj_b, gamma1,
              ln2_g, ln2_b, fc1_w, fc1_b, fc2_w, fc2_b, gamma2)

    out = block_forward(x, params)
    out = jax.block_until_ready(out)

    ref = block_reference(x, params)
    # slightly relaxed atol for the approximate (EUP) softmax reciprocal
    np.testing.assert_allclose(np.asarray(out), np.asarray(ref),
                               rtol=2e-4, atol=2e-4)

    print("KERNEL_OK")
</pallas_src>

<mosaic_0001>
module attributes {stable_mosaic.version = 11 : i64} {
  func.func @block_kernel(%arg0: i32, %arg1: memref<16x32xf32, #tpu.memory_space<vmem>>, %arg2: memref<2x32x128xf32, #tpu.memory_space<vmem>>, %arg3: memref<128x32xf32, #tpu.memory_space<vmem>>, %arg4: memref<4x8x32xf32, #tpu.memory_space<vmem>>, %arg5: memref<16x128xf32, #tpu.memory_space<vmem>>, %arg6: memref<16x32xf32, #tpu.memory_space<vmem>>) attributes {dimension_semantics = [#tpu.dimension_semantics<arbitrary>], iteration_bounds = array<i64: 1>, scalar_prefetch = 0 : i64, scratch_operands = 0 : i64, tpu.core_type = #tpu.core_type<tc>, window_params = [{pipeline_mode = #tpu.pipeline_mode<synchronous>, transform_indices = @transform_0, window_bounds = array<i64: 16, 32>}, {pipeline_mode = #tpu.pipeline_mode<synchronous>, transform_indices = @transform_1, window_bounds = array<i64: 2, 32, 128>}, {pipeline_mode = #tpu.pipeline_mode<synchronous>, transform_indices = @transform_2, window_bounds = array<i64: 128, 32>}, {pipeline_mode = #tpu.pipeline_mode<synchronous>, transform_indices = @transform_3, window_bounds = array<i64: 4, 8, 32>}, {pipeline_mode = #tpu.pipeline_mode<synchronous>, transform_indices = @transform_4, window_bounds = array<i64: 16, 128>}, {pipeline_mode = #tpu.pipeline_mode<synchronous>, transform_indices = @transform_5, window_bounds = array<i64: 16, 32>}]} {
    %c0 = arith.constant 0 : index
    %c0_0 = arith.constant 0 : index
    %0 = vector.load %arg1[%c0, %c0_0] : memref<16x32xf32, #tpu.memory_space<vmem>>, vector<16x32xf32>
    %c0_1 = arith.constant 0 : index
    %c0_2 = arith.constant 0 : index
    %1 = vector.load %arg5[%c0_1, %c0_2] : memref<16x128xf32, #tpu.memory_space<vmem>>, vector<16x128xf32>
    %2 = vector.extract_strided_slice %1 {offsets = [0, 0], sizes = [1, 32], strides = [1, 1]} : vector<16x128xf32> to vector<1x32xf32>
    %3 = vector.extract_strided_slice %1 {offsets = [1, 0], sizes = [1, 32], strides = [1, 1]} : vector<16x128xf32> to vector<1x32xf32>
    %4 = vector.extract_strided_slice %1 {offsets = [2, 0], sizes = [1, 128], strides = [1, 1]} : vector<16x128xf32> to vector<1x128xf32>
    %5 = vector.extract_strided_slice %1 {offsets = [3, 0], sizes = [1, 32], strides = [1, 1]} : vector<16x128xf32> to vector<1x32xf32>
    %6 = vector.extract_strided_slice %1 {offsets = [4, 0], sizes = [1, 32], strides = [1, 1]} : vector<16x128xf32> to vector<1x32xf32>
    %7 = vector.extract_strided_slice %1 {offsets = [5, 0], sizes = [1, 32], strides = [1, 1]} : vector<16x128xf32> to vector<1x32xf32>
    %8 = vector.extract_strided_slice %1 {offsets = [6, 0], sizes = [1, 32], strides = [1, 1]} : vector<16x128xf32> to vector<1x32xf32>
    %9 = vector.extract_strided_slice %1 {offsets = [7, 0], sizes = [1, 128], strides = [1, 1]} : vector<16x128xf32> to vector<1x128xf32>
    %10 = vector.extract_strided_slice %1 {offsets = [8, 0], sizes = [1, 32], strides = [1, 1]} : vector<16x128xf32> to vector<1x32xf32>
    %11 = vector.extract_strided_slice %1 {offsets = [9, 0], sizes = [1, 32], strides = [1, 1]} : vector<16x128xf32> to vector<1x32xf32>
    %cst = arith.constant dense<0.000000e+00> : vector<16xf32>
    %12 = vector.multi_reduction <add>, %0, %cst [1] : vector<16x32xf32> to vector<16xf32>
    %13 = vector.shape_cast %12 : vector<16xf32> to vector<16x1xf32>
    %cst_3 = arith.constant 3.200000e+01 : f32
    %14 = vector.broadcast %cst_3 : f32 to vector<16x1xf32>
    %15 = arith.divf %13, %14 : vector<16x1xf32>
    %16 = vector.broadcast %15 : vector<16x1xf32> to vector<16x32xf32>
    %17 = arith.subf %0, %16 : vector<16x32xf32>
    %18 = arith.mulf %17, %17 : vector<16x32xf32>
    %cst_4 = arith.constant dense<0.000000e+00> : vector<16xf32>
    %19 = vector.multi_reduction <add>, %18, %cst_4 [1] : vector<16x32xf32> to vector<16xf32>
    %20 = vector.shape_cast %19 : vector<16xf32> to vector<16x1xf32>
    %cst_5 = arith.constant 3.200000e+01 : f32
    %21 = vector.broadcast %cst_5 : f32 to vector<16x1xf32>
    %22 = arith.divf %20, %21 : vector<16x1xf32>
    %23 = vector.broadcast %15 : vector<16x1xf32> to vector<16x32xf32>
    %24 = arith.subf %0, %23 : vector<16x32xf32>
    %cst_6 = arith.constant 9.99999974E-6 : f32
    %25 = vector.broadcast %cst_6 : f32 to vector<16x1xf32>
    %26 = arith.addf %22, %25 : vector<16x1xf32>
    %27 = math.rsqrt %26 : vector<16x1xf32>
    %28 = vector.broadcast %27 : vector<16x1xf32> to vector<16x32xf32>
    %29 = arith.mulf %24, %28 : vector<16x32xf32>
    %30 = vector.broadcast %2 : vector<1x32xf32> to vector<16x32xf32>
    %31 = arith.mulf %29, %30 : vector<16x32xf32>
    %32 = vector.broadcast %3 : vector<1x32xf32> to vector<16x32xf32>
    %33 = arith.addf %31, %32 : vector<16x32xf32>
    %c0_7 = arith.constant 0 : index
    %c0_8 = arith.constant 0 : index
    %c0_9 = arith.constant 0 : index
    %34 = vector.load %arg2[%c0_7, %c0_8, %c0_9] : memref<2x32x128xf32, #tpu.memory_space<vmem>>, vector<1x32x128xf32>
    %35 = vector.shape_cast %34 : vector<1x32x128xf32> to vector<32x128xf32>
    %cst_10 = arith.constant dense<0.000000e+00> : vector<16x128xf32>
    %36 = tpu.matmul %33, %35, %cst_10 {dimension_numbers = #tpu.dot_dimension_numbers<[1], [0], [0], [1], [0, 0, 1, 1], [], []>} : vector<16x32xf32>, vector<32x128xf32>, vector<16x128xf32> -> vector<16x128xf32>
    %37 = vector.broadcast %4 : vector<1x128xf32> to vector<16x128xf32>
    %38 = arith.addf %36, %37 : vector<16x128xf32>
    %39 = vector.extract_strided_slice %38 {offsets = [0, 0], sizes = [16, 8], strides = [1, 1]} : vector<16x128xf32> to vector<16x8xf32>
    %40 = vector.shape_cast %39 : vector<16x8xf32> to vector<2x8x8xf32>
    %41 = vector.extract_strided_slice %38 {offsets = [0, 32], sizes = [16, 8], strides = [1, 1]} : vector<16x128xf32> to vector<16x8xf32>
    %42 = vector.shape_cast %41 : vector<16x8xf32> to vector<2x8x8xf32>
    %43 = vector.extract_strided_slice %38 {offsets = [0, 64], sizes = [16, 8], strides = [1, 1]} : vector<16x128xf32> to vector<16x8xf32>
    %44 = vector.shape_cast %43 : vector<16x8xf32> to vector<2x8x8xf32>
    %45 = vector.extract_strided_slice %38 {offsets = [0, 8], sizes = [16, 8], strides = [1, 1]} : vector<16x128xf32> to vector<16x8xf32>
    %46 = vector.shape_cast %45 : vector<16x8xf32> to vector<2x8x8xf32>
    %47 = vector.extract_strided_slice %38 {offsets = [0, 40], sizes = [16, 8], strides = [1, 1]} : vector<16x128xf32> to vector<16x8xf32>
    %48 = vector.shape_cast %47 : vector<16x8xf32> to vector<2x8x8xf32>
    %49 = vector.extract_strided_slice %38 {offsets = [0, 72], sizes = [16, 8], strides = [1, 1]} : vector<16x128xf32> to vector<16x8xf32>
    %50 = vector.shape_cast %49 : vector<16x8xf32> to vector<2x8x8xf32>
    %51 = vector.extract_strided_slice %38 {offsets = [0, 16], sizes = [16, 8], strides = [1, 1]} : vector<16x128xf32> to vector<16x8xf32>
    %52 = vector.shape_cast %51 : vector<16x8xf32> to vector<2x8x8xf32>
    %53 = vector.extract_strided_slice %38 {offsets = [0, 48], sizes = [16, 8], strides = [1, 1]} : vector<16x128xf32> to vector<16x8xf32>
    %54 = vector.shape_cast %53 : vector<16x8xf32> to vector<2x8x8xf32>
    %55 = vector.extract_strided_slice %38 {offsets = [0, 80], sizes = [16, 8], strides = [1, 1]} : vector<16x128xf32> to vector<16x8xf32>
    %56 = vector.shape_cast %55 : vector<16x8xf32> to vector<2x8x8xf32>
    %57 = vector.extract_strided_slice %38 {offsets = [0, 24], sizes = [16, 8], strides = [1, 1]} : vector<16x128xf32> to vector<16x8xf32>
    %58 = vector.shape_cast %57 : vector<16x8xf32> to vector<2x8x8xf32>
    %59 = vector.extract_strided_slice %38 {offsets = [0, 56], sizes = [16, 8], strides = [1, 1]} : vector<16x128xf32> to vector<16x8xf32>
    %60 = vector.shape_cast %59 : vector<16x8xf32> to vector<2x8x8xf32>
    %61 = vector.extract_strided_slice %38 {offsets = [0, 88], sizes = [16, 8], strides = [1, 1]} : vector<16x128xf32> to vector<16x8xf32>
    %62 = vector.shape_cast %61 : vector<16x8xf32> to vector<2x8x8xf32>
    %63 = tpu.concatenate %40, %46, %52, %58 in 0 : vector<2x8x8xf32>, vector<2x8x8xf32>, vector<2x8x8xf32>, vector<2x8x8xf32> -> vector<8x8x8xf32>
    %64 = tpu.concatenate %42, %48, %54, %60 in 0 : vector<2x8x8xf32>, vector<2x8x8xf32>, vector<2x8x8xf32>, vector<2x8x8xf32> -> vector<8x8x8xf32>
    %65 = tpu.concatenate %44, %50, %56, %62 in 0 : vector<2x8x8xf32>, vector<2x8x8xf32>, vector<2x8x8xf32>, vector<2x8x8xf32> -> vector<8x8x8xf32>
    "tpu.trace_start"() <{level = 10 : i32, message = "gnd,gmd->gnm"}> : () -> ()
    %cst_11 = arith.constant dense<0.000000e+00> : vector<8x8x8xf32>
    %66 = tpu.matmul %63, %64, %cst_11 {dimension_numbers = #tpu.dot_dimension_numbers<[2], [2], [1], [1], [0, 0, 0, 1, 1, 1], [0], [0]>} : vector<8x8x8xf32>, vector<8x8x8xf32>, vector<8x8x8xf32> -> vector<8x8x8xf32>
    "tpu.trace_stop"() : () -> ()
    %cst_12 = arith.constant dense<0xFF800000> : vector<8x8xf32>
    %67 = vector.multi_reduction <maximumf>, %66, %cst_12 [2] : vector<8x8x8xf32> to vector<8x8xf32>
    %68 = vector.shape_cast %67 : vector<8x8xf32> to vector<8x8x1xf32>
    %69 = vector.broadcast %68 : vector<8x8x1xf32> to vector<8x8x8xf32>
    %70 = arith.subf %66, %69 : vector<8x8x8xf32>
    %71 = math.exp %70 : vector<8x8x8xf32>
    %cst_13 = arith.constant dense<0.000000e+00> : vector<8x8xf32>
    %72 = vector.multi_reduction <add>, %71, %cst_13 [2] : vector<8x8x8xf32> to vector<8x8xf32>
    %73 = vector.shape_cast %72 : vector<8x8xf32> to vector<8x8x1xf32>
    %74 = tpu.reciprocal %73 {approx = true} : vector<8x8x1xf32> -> vector<8x8x1xf32>
    %75 = vector.broadcast %74 : vector<8x8x1xf32> to vector<8x8x8xf32>
    %76 = arith.mulf %71, %75 : vector<8x8x8xf32>
    "tpu.trace_start"() <{level = 10 : i32, message = "gnm,gmd->gnd"}> : () -> ()
    %cst_14 = arith.constant dense<0.000000e+00> : vector<8x8x8xf32>
    %77 = tpu.matmul %76, %65, %cst_14 {dimension_numbers = #tpu.dot_dimension_numbers<[2], [1], [1], [2], [0, 0, 0, 1, 1, 2], [0], [0]>} : vector<8x8x8xf32>, vector<8x8x8xf32>, vector<8x8x8xf32> -> vector<8x8x8xf32>
    "tpu.trace_stop"() : () -> ()
    %78 = vector.shape_cast %77 : vector<8x8x8xf32> to vector<4x16x8xf32>
    %c0_15 = arith.constant 0 : index
    %c0_16 = arith.constant 0 : index
    %c0_17 = arith.constant 0 : index
    %79 = vector.load %arg4[%c0_15, %c0_16, %c0_17] : memref<4x8x32xf32, #tpu.memory_space<vmem>>, vector<4x8x32xf32>
    "tpu.trace_start"() <{level = 10 : i32, message = "hmd,hdc->hmc"}> : () -> ()
    %cst_18 = arith.constant dense<0.000000e+00> : vector<4x16x32xf32>
    %80 = tpu.matmul %78, %79, %cst_18 {dimension_numbers = #tpu.dot_dimension_numbers<[2], [1], [1], [2], [0, 0, 0, 1, 1, 2], [0], [0]>} : vector<4x16x8xf32>, vector<4x8x32xf32>, vector<4x16x32xf32> -> vector<4x16x32xf32>
    "tpu.trace_stop"() : () -> ()
    %cst_19 = arith.constant dense<0.000000e+00> : vector<16x32xf32>
    %81 = vector.multi_reduction <add>, %80, %cst_19 [0] : vector<4x16x32xf32> to vector<16x32xf32>
    %82 = vector.broadcast %5 : vector<1x32xf32> to vector<16x32xf32>
    %83 = arith.addf %81, %82 : vector<16x32xf32>
    %84 = vector.broadcast %6 : vector<1x32xf32> to vector<16x32xf32>
    %85 = arith.mulf %84, %83 : vector<16x32xf32>
    %86 = arith.addf %0, %85 : vector<16x32xf32>
    %cst_20 = arith.constant dense<0.000000e+00> : vector<16xf32>
    %87 = vector.multi_reduction <add>, %86, %cst_20 [1] : vector<16x32xf32> to vector<16xf32>
    %88 = vector.shape_cast %87 : vector<16xf32> to vector<16x1xf32>
    %cst_21 = arith.constant 3.200000e+01 : f32
    %89 = vector.broadcast %cst_21 : f32 to vector<16x1xf32>
    %90 = arith.divf %88, %89 : vector<16x1xf32>
    %91 = vector.broadcast %90 : vector<16x1xf32> to vector<16x32xf32>
    %92 = arith.subf %86, %91 : vector<16x32xf32>
    %93 = arith.mulf %92, %92 : vector<16x32xf32>
    %cst_22 = arith.constant dense<0.000000e+00> : vector<16xf32>
    %94 = vector.multi_reduction <add>, %93, %cst_22 [1] : vector<16x32xf32> to vector<16xf32>
    %95 = vector.shape_cast %94 : vector<16xf32> to vector<16x1xf32>
    %cst_23 = arith.constant 3.200000e+01 : f32
    %96 = vector.broadcast %cst_23 : f32 to vector<16x1xf32>
    %97 = arith.divf %95, %96 : vector<16x1xf32>
    %98 = vector.broadcast %90 : vector<16x1xf32> to vector<16x32xf32>
    %99 = arith.subf %86, %98 : vector<16x32xf32>
    %cst_24 = arith.constant 9.99999974E-6 : f32
    %100 = vector.broadcast %cst_24 : f32 to vector<16x1xf32>
    %101 = arith.addf %97, %100 : vector<16x1xf32>
    %102 = math.rsqrt %101 : vector<16x1xf32>
    %103 = vector.broadcast %102 : vector<16x1xf32> to vector<16x32xf32>
    %104 = arith.mulf %99, %103 : vector<16x32xf32>
    %105 = vector.broadcast %7 : vector<1x32xf32> to vector<16x32xf32>
    %106 = arith.mulf %104, %105 : vector<16x32xf32>
    %107 = vector.broadcast %8 : vector<1x32xf32> to vector<16x32xf32>
    %108 = arith.addf %106, %107 : vector<16x32xf32>
    %c1 = arith.constant 1 : index
    %c0_25 = arith.constant 0 : index
    %c0_26 = arith.constant 0 : index
    %109 = vector.load %arg2[%c1, %c0_25, %c0_26] : memref<2x32x128xf32, #tpu.memory_space<vmem>>, vector<1x32x128xf32>
    %110 = vector.shape_cast %109 : vector<1x32x128xf32> to vector<32x128xf32>
    %cst_27 = arith.constant dense<0.000000e+00> : vector<16x128xf32>
    %111 = tpu.matmul %108, %110, %cst_27 {dimension_numbers = #tpu.dot_dimension_numbers<[1], [0], [0], [1], [0, 0, 1, 1], [], []>} : vector<16x32xf32>, vector<32x128xf32>, vector<16x128xf32> -> vector<16x128xf32>
    %112 = vector.broadcast %9 : vector<1x128xf32> to vector<16x128xf32>
    %113 = arith.addf %111, %112 : vector<16x128xf32>
    %cst_28 = arith.constant 5.000000e-01 : f32
    %114 = vector.broadcast %cst_28 : f32 to vector<16x128xf32>
    %115 = arith.mulf %114, %113 : vector<16x128xf32>
    %cst_29 = arith.constant 0.707106769 : f32
    %116 = vector.broadcast %cst_29 : f32 to vector<16x128xf32>
    %117 = arith.mulf %113, %116 : vector<16x128xf32>
    %118 = math.erf %117 : vector<16x128xf32>
    %cst_30 = arith.constant 1.000000e+00 : f32
    %119 = vector.broadcast %cst_30 : f32 to vector<16x128xf32>
    %120 = arith.addf %119, %118 : vector<16x128xf32>
    %121 = arith.mulf %115, %120 : vector<16x128xf32>
    %c0_31 = arith.constant 0 : index
    %c0_32 = arith.constant 0 : index
    %122 = vector.load %arg3[%c0_31, %c0_32] : memref<128x32xf32, #tpu.memory_space<vmem>>, vector<128x32xf32>
    %cst_33 = arith.constant dense<0.000000e+00> : vector<16x32xf32>
    %123 = tpu.matmul %121, %122, %cst_33 {dimension_numbers = #tpu.dot_dimension_numbers<[1], [0], [0], [1], [0, 0, 1, 1], [], []>} : vector<16x128xf32>, vector<128x32xf32>, vector<16x32xf32> -> vector<16x32xf32>
    %124 = vector.broadcast %10 : vector<1x32xf32> to vector<16x32xf32>
    %125 = arith.addf %123, %124 : vector<16x32xf32>
    %126 = vector.broadcast %11 : vector<1x32xf32> to vector<16x32xf32>
    %127 = arith.mulf %126, %125 : vector<16x32xf32>
    %128 = arith.addf %86, %127 : vector<16x32xf32>
    %c0_34 = arith.constant 0 : index
    %c0_35 = arith.constant 0 : index
    %129 = vector.load %arg6[%c0_34, %c0_35] : memref<16x32xf32, #tpu.memory_space<vmem>>, vector<16x32xf32>
    tpu.vector_store %arg6[%c0_34, %c0_35], %128 {strides = array<i32>} : memref<16x32xf32, #tpu.memory_space<vmem>>, vector<16x32xf32>,
    return
  }
  func.func @transform_0(%arg0: i32) -> (i32, i32) {
    %c0_i32 = arith.constant 0 : i32
    %c0_i32_0 = arith.constant 0 : i32
    %c0_i32_1 = arith.constant 0 : i32
    return %c0_i32, %c0_i32_0 : i32, i32
  }
  func.func @transform_1(%arg0: i32) -> (i32, i32, i32) {
    %c0_i32 = arith.constant 0 : i32
    %c0_i32_0 = arith.constant 0 : i32
    %c0_i32_1 = arith.constant 0 : i32
    %c0_i32_2 = arith.constant 0 : i32
    return %c0_i32, %c0_i32_0, %c0_i32_1 : i32, i32, i32
  }
  func.func @transform_2(%arg0: i32) -> (i32, i32) {
    %c0_i32 = arith.constant 0 : i32
    %c0_i32_0 = arith.constant 0 : i32
    %c0_i32_1 = arith.constant 0 : i32
    return %c0_i32, %c0_i32_0 : i32, i32
  }
  func.func @transform_3(%arg0: i32) -> (i32, i32, i32) {
    %c0_i32 = arith.constant 0 : i32
    %c0_i32_0 = arith.constant 0 : i32
    %c0_i32_1 = arith.constant 0 : i32
    %c0_i32_2 = arith.constant 0 : i32
    return %c0_i32, %c0_i32_0, %c0_i32_1 : i32, i32, i32
  }
  func.func @transform_4(%arg0: i32) -> (i32, i32) {
    %c0_i32 = arith.constant 0 : i32
    %c0_i32_0 = arith.constant 0 : i32
    %c0_i32_1 = arith.constant 0 : i32
    return %c0_i32, %c0_i32_0 : i32, i32
  }
  func.func @transform_5(%arg0: i32) -> (i32, i32) {
    %c0_i32 = arith.constant 0 : i32
    %c0_i32_0 = arith.constant 0 : i32
    %c0_i32_1 = arith.constant 0 : i32
    return %c0_i32, %c0_i32_0 : i32, i32
  }
}

</mosaic_0001>

<bundles_post_ra>
// kernel: tpu_custom_call.1
= control target key start
LH: loop header
LB: loop body
LE: loop exit
PB: predicated region body
PF: predicated region fallthrough
CT: control target
= control target key end

     0   :  { %vm25_vm0 = vcmask 261120   ;;  %s2810_s0 = inlined_call_operand.vmem [shape: f32[16,32], index: 0, kind: input, shape index: {}]   ;;  %s2811_s1 = inlined_call_operand.vmem [shape: f32[2,32,128], index: 1, kind: input, shape index: {}]   ;;  %s2812_s2 = inlined_call_operand.vmem [shape: f32[128,32], index: 2, kind: input, shape index: {}]   ;;  %s2813_s3 = inlined_call_operand.vmem [shape: f32[4,8,32], index: 3, kind: input, shape index: {}]   ;;  %s2814_s4 = inlined_call_operand.vmem [shape: f32[16,128], index: 4, kind: input, shape index: {}]   ;;  %s2815_s5 = inlined_call_operand.hbm [shape: f32[16,32], index: 5, kind: output, shape index: {}]  }
   0x1   :  { %v2478_v0 = vld [vmem:[%s2810_s0] sm:$0xff]  ;;  %v2483_v1 = vld [vmem:[%s2810_s0 + $0x8] sm:$0xff] }
   0x2   :  { %10 = vsyncpa [#allocation3], 0  ;;  %v26_v2 = vsel %vm25_vm0, %v2478_v0, 0.0  ;;  %v29_v3 = vsel %vm25_vm0, %v2483_v1, 0.0  ;;  %v68_v14 = vld [vmem:[%s2811_s1 + $0x18] sm:$0xff]  ;;  %v67_v15 = vld [vmem:[%s2811_s1 + $0x10] sm:$0xff]  ;;  %v53_v23 = vlaneseq }
   0x3   :  { %27 = vadd.xlane.f32.xlu0 %v26_v2  ;;  %2202 = vmatprep.subr.mxu0 %v68_v14  ;;  %v66_v16 = vld [vmem:[%s2811_s1 + $0x8] sm:$0xff]  ;;  %v65_v17 = vld [vmem:[%s2811_s1] sm:$0xff]  ;;  %v2435_v41 = vmov 0.0   ;;  %vm2436_vm1 = vmmov 0   ;;  %s2437_s6 = smov 120   ;;  %s2438_s7 = smov 112  }
   0x4   :  { %2203 = vmatpush3.msra.mxu0 %v68_v14  ;;  %v2505_v25 = vshrl.u32 %v53_v23, 7  ;;  %v2511_v27 = vld [vmem:[%s2814_s4] sm:$0xff]  ;;  %2238 = vmatprep.subr.mxu1 %v2435_v41  ;;  %s2439_s8 = smov 104   ;;  %s2440_s9 = smov 96   ;;  %vm170_vm2 = vcmask 64512  }
   0x5   :  { %2204 = vmatprep.subr.mxu0 %v67_v15  ;;  %2240 = vmatprep.mubr.msk.f32.mxu1 %vm2436_vm1, %v2435_v41  ;;  %s2441_s10 = smov 64   ;;  %s2442_s30 = smov [#allocation2]  }
   0x6   :  { %2205 = vmatpush3.msra.mxu0 %v67_v15  ;;  %v55_v26 = vsub.s32 0, %v2505_v25  ;;  %v61_v28 = vsub.s32 1, %v2505_v25  ;;  %v71_v39 = vsub.s32 2, %v2505_v25 }
   0x7   :  { %30 = vadd.xlane.f32.xlu0 %v29_v3  ;;  %2206 = vmatprep.subr.mxu0 %v66_v16 }
   0x8   :  { %2207 = vmatpush3.msra.mxu0 %v66_v16  ;;  %v56_v29 = vrot.slane %v2511_v27, %v55_v26  ;;  %v62_v32 = vrot.slane %v2511_v27, %v61_v28  ;;  %v72_v40 = vrot.slane %v2511_v27, %v71_v39 }
   0x9   :  { %2208 = vmatprep.subr.mxu0 %v65_v17 }
   0xa   :  { %2209 = vmatpush3.msra.mxu0 %v65_v17 }
   0xb   :  { %2213 = vmatprep.subr.mxu0 %v2435_v41 }
  0x8c   :  { %v28_v4 = vpop.xlane.xlu0 %27 }
  0x8d   :  { %v33_v5 = vmul.f32 0.03125, %v28_v4 }
  0x8f   :  { %v35_v6 = vsub.f32 %v2478_v0, %v33_v5 }
  0x90   :  { %v31_v7 = vpop.xlane.xlu0 %30 }
  0x91   :  { %v34_v8 = vmul.f32 0.03125, %v31_v7  ;;  %v37_v9 = vmul.f32 %v35_v6, %v35_v6 }
  0x93   :  { %v36_v10 = vsub.f32 %v2483_v1, %v34_v8  ;;  %v39_v11 = vsel %vm25_vm0, %v37_v9, 0.0 }
  0x94   :  { %40 = vadd.xlane.f32.xlu1 %v39_v11 }
  0x95   :  { %v38_v12 = vmul.f32 %v36_v10, %v36_v10 }
  0x97   :  { %v42_v13 = vsel %vm25_vm0, %v38_v12, 0.0 }
  0x98   :  { %43 = vadd.xlane.f32.xlu1 %v42_v13 }
 0x11d   :  { %v41_v18 = vpop.xlane.xlu1 %40 }
 0x11e   :  { %v45_v19 = vmul.f32 0.03125, %v41_v18 }
 0x120   :  { %v47_v20 = vadd.f32 1e-05, %v45_v19 }
 0x121   :  { %v44_v21 = vpop.xlane.xlu1 %43 }
 0x122   :  { %2369 = vrsqrt.f32 %v47_v20  ;;  %v46_v22 = vmul.f32 0.03125, %v44_v21 }
 0x124   :  { %v48_v24 = vadd.f32 1e-05, %v46_v22 }
 0x126   :  { %2371 = vrsqrt.f32 %v48_v24 }
 0x12f   :  { %v2370_v30 = vpop.eup %2369 }
 0x130   :  { %v51_v31 = vmul.f32 %v2370_v30, %v35_v6 }
 0x132   :  { %v57_v33 = vmul.f32 %v56_v29, %v51_v31 }
 0x133   :  { %v2372_v34 = vpop.eup %2371 }
 0x134   :  { %v52_v35 = vmul.f32 %v2372_v34, %v36_v10  ;;  %v63_v36 = vadd.f32 %v62_v32, %v57_v33 }
 0x136   :  { %v58_v37 = vmul.f32 %v56_v29, %v52_v35  ;;  %2210 = vmatprep.mubr.msk.f32.mxu0 %vm25_vm0, %v63_v36 }
 0x138   :  { %v64_v38 = vadd.f32 %v62_v32, %v58_v37 }
 0x13a   :  { %2211 = vmatmul.mubr.msk.f32.vlgmr.msra.gmra.mxu0 %vm25_vm0, %v64_v38 }
 0x13b   :  { %2215 = vmatprep.mubr.msk.f32.mxu0 %vm2436_vm1, %v2435_v41 }
 0x1fa   :  { %v2212_v42 = vpop.f32.mrf.mxu0 }
 0x1fb   :  { %v2526_v43 = vadd.f32 %v2212_v42, %v72_v40 }
 0x1fc   :  { %v145_v44 = vpop.f32.mrf.mxu0 }
 0x1fd   :  { %v2532_v45 = vadd.f32 %v145_v44, %v72_v40  ;;  %158 = vrot.lane.b32.xlu1 %v2526_v43, %s2437_s6 }
 0x1ff   :  { %156 = vrot.lane.b32.xlu0 %v2532_v45, %s2437_s6 }
 0x201   :  { %160 = vrot.lane.b32.xlu1 %v2532_v45, %s2438_s7 }
 0x203   :  { %164 = vrot.lane.b32.xlu0 %v2532_v45, %s2439_s8 }
 0x205   :  { %162 = vrot.lane.b32.xlu1 %v2526_v43, %s2438_s7 }
 0x207   :  { %168 = vrot.lane.b32.xlu0 %v2532_v45, %s2440_s9 }
 0x209   :  { %166 = vrot.lane.b32.xlu1 %v2526_v43, %s2439_s8 }
 0x20d   :  { %245 = vrot.lane.b32.xlu1 %v2526_v43, %s2440_s9 }
 0x26f   :  { %v2542_v46 = vpop.permute.xlu1 %158 }
 0x270   :  { %397 = vrot.lane.b32.xlu1 %v2542_v46, %s2440_s9 }
 0x271   :  { %v2545_v47 = vpop.permute.xlu0 %156 }
 0x272   :  { %321 = vrot.lane.b32.xlu0 %v2545_v47, %s2440_s9 }
 0x273   :  { %v2548_v48 = vpop.permute.xlu1 %160 }
 0x275   :  { %v2550_v49 = vpop.permute.xlu0 %164 }
 0x276   :  { %473 = vrot.lane.b32.xlu0 %v2548_v48, %s2440_s9 }
 0x277   :  { %v2553_v50 = vpop.permute.xlu1 %162 }
 0x278   :  { %549 = vrot.lane.b32.xlu1 %v2553_v50, %s2440_s9 }
 0x279   :  { %v169_v51 = vpop.permute.xlu0 %168 }
 0x27a   :  { %625 = vrot.lane.b32.xlu0 %v2550_v49, %s2440_s9  ;;  %2214 = vmatpush3.xpose.msk.msra.mxu0 %vm170_vm2, %v169_v51 }
 0x27b   :  { %v2558_v52 = vpop.permute.xlu1 %166  ;;  %2218 = vmatprep.subr.mxu0 %v2435_v41 }
 0x27c   :  { %701 = vrot.lane.b32.xlu1 %v2558_v52, %s2440_s9 }
 0x27d   :  { %2216 = vmatmul.mubr.msk.f32.vlgmr.msra.gmra.mxu0 %vm170_vm2, %v2532_v45 }
 0x27e   :  { %2220 = vmatprep.mubr.msk.f32.mxu0 %vm2436_vm1, %v2435_v41 }
 0x27f   :  { %v246_v53 = vpop.permute.xlu1 %245 }
 0x280   :  { %2219 = vmatpush3.xpose.msk.msra.mxu0 %vm170_vm2, %v246_v53 }
 0x281   :  { %2223 = vmatprep.subr.mxu0 %v2435_v41 }
 0x283   :  { %2221 = vmatmul.mubr.msk.f32.vlgmr.msra.gmra.mxu0 %vm170_vm2, %v2526_v43 }
 0x284   :  { %2225 = vmatprep.mubr.msk.f32.mxu0 %vm2436_vm1, %v2435_v41 }
 0x2e2   :  { %v398_v55 = vpop.permute.xlu1 %397 }
 0x2e4   :  { %v322_v54 = vpop.permute.xlu0 %321 }
 0x2e5   :  { %2224 = vmatpush3.xpose.msk.msra.mxu0 %vm170_vm2, %v322_v54 }
 0x2e6   :  { %2228 = vmatprep.subr.mxu0 %v2435_v41 }
 0x2e8   :  { %2226 = vmatmul.mubr.msk.f32.vlgmr.msra.gmra.mxu0 %vm170_vm2, %v2545_v47  ;;  %v474_v56 = vpop.permute.xlu0 %473 }
 0x2e9   :  { %2229 = vmatpush3.xpose.msk.msra.mxu0 %vm170_vm2, %v398_v55  ;;  %2230 = vmatprep.mubr.msk.f32.mxu0 %vm2436_vm1, %v2435_v41 }
 0x2ea   :  { %v550_v57 = vpop.permute.xlu1 %549  ;;  %2233 = vmatprep.subr.mxu0 %v2435_v41 }
 0x2eb   :  { %2239 = vmatpush3.xpose.msk.msra.mxu1 %vm170_vm2, %v550_v57 }
 0x2ec   :  { %2231 = vmatmul.mubr.msk.f32.vlgmr.msra.gmra.mxu0 %vm170_vm2, %v2542_v46  ;;  %2248 = vmatprep.subr.mxu1 %v2435_v41  ;;  %v626_v59 = vpop.permute.xlu0 %625 }
 0x2ed   :  { %2234 = vmatpush3.xpose.msk.msra.mxu0 %vm170_vm2, %v474_v56  ;;  %2235 = vmatprep.mubr.msk.f32.mxu0 %vm2436_vm1, %v2435_v41 }
 0x2ee   :  { %2241 = vmatmul.mubr.msk.f32.vlgmr.msra.gmra.mxu1 %vm170_vm2, %v2553_v50  ;;  %v702_v58 = vpop.permute.xlu1 %701  ;;  %2243 = vmatprep.subr.mxu0 %v2435_v41 }
 0x2ef   :  { %2249 = vmatpush3.xpose.msk.msra.mxu1 %vm170_vm2, %v702_v58  ;;  %2250 = vmatprep.mubr.msk.f32.mxu1 %vm2436_vm1, %v2435_v41 }
 0x2f0   :  { %2236 = vmatmul.mubr.msk.f32.vlgmr.msra.gmra.mxu0 %vm170_vm2, %v2548_v48  ;;  %2258 = vmatprep.subr.mxu1 %v2435_v41 }
 0x2f1   :  { %2244 = vmatpush3.xpose.msk.msra.mxu0 %vm170_vm2, %v626_v59  ;;  %2245 = vmatprep.mubr.msk.f32.mxu0 %vm2436_vm1, %v2435_v41 }
 0x2f2   :  { %2251 = vmatmul.mubr.msk.f32.vlgmr.msra.gmra.mxu1 %vm170_vm2, %v2558_v52  ;;  %2253 = vmatprep.subr.mxu0 %v2435_v41 }
 0x2f3   :  { %2260 = vmatprep.mubr.msk.f32.mxu1 %vm2436_vm1, %v2435_v41 }
 0x2f4   :  { %2246 = vmatmul.mubr.msk.f32.vlgmr.msra.gmra.mxu0 %vm170_vm2, %v2550_v49 }
 0x2f5   :  { %2255 = vmatprep.mubr.msk.f32.mxu0 %vm2436_vm1, %v2435_v41 }
 0x33d   :  { %v241_v60 = vpop.f32.mrf.mxu0 }
 0x33e   :  { %v777_v61 = vsel %vm170_vm2, %v241_v60, -inf }
 0x33f   :  { %778 = vmax.xlane.f32.xlu0 %v777_v61  ;;  %v2217_v62 = vpop.f32.mrf.mxu0 }
 0x343   :  { %v317_v63 = vpop.f32.mrf.mxu0 }
 0x344   :  { %v780_v2 = vsel %vm170_vm2, %v317_v63, -inf }
 0x345   :  { %781 = vmax.xlane.f32.xlu1 %v780_v2  ;;  %v2222_v3 = vpop.f32.mrf.mxu0 }
 0x3a8   :  { %v393_v4 = vpop.f32.mrf.mxu0 }
 0x3a9   :  { %v783_v5 = vsel %vm170_vm2, %v393_v4, -inf }
 0x3aa   :  { %784 = vmax.xlane.f32.xlu0 %v783_v5  ;;  %v2227_v6 = vpop.f32.mrf.mxu0 }
 0x3ac   :  { %v469_v7 = vpop.f32.mrf.mxu0 }
 0x3ad   :  { %v786_v8 = vsel %vm170_vm2, %v469_v7, -inf }
 0x3ae   :  { %v621_v9 = vpop.f32.mrf.mxu1  ;;  %787 = vmax.xlane.f32.xlu0 %v786_v8  ;;  %v2232_v10 = vpop.f32.mrf.mxu0 }
 0x3af   :  { %v792_v11 = vsel %vm170_vm2, %v621_v9, -inf }
 0x3b0   :  { %v2242_v12 = vpop.f32.mrf.mxu1  ;;  %793 = vmax.xlane.f32.xlu1 %v792_v11  ;;  %v545_v13 = vpop.f32.mrf.mxu0 }
 0x3b1   :  { %v789_v14 = vsel %vm170_vm2, %v545_v13, -inf }
 0x3b2   :  { %v773_v15 = vpop.f32.mrf.mxu1  ;;  %790 = vmax.xlane.f32.xlu0 %v789_v14  ;;  %v2237_v16 = vpop.f32.mrf.mxu0 }
 0x3b3   :  { %v798_v17 = vsel %vm170_vm2, %v773_v15, -inf }
 0x3b4   :  { %v2252_v18 = vpop.f32.mrf.mxu1  ;;  %799 = vmax.xlane.f32.xlu1 %v798_v17  ;;  %v697_v19 = vpop.f32.mrf.mxu0 }
 0x3b5   :  { %v795_v20 = vsel %vm170_vm2, %v697_v19, -inf }
 0x3b6   :  { %796 = vmax.xlane.f32.xlu0 %v795_v20  ;;  %v2247_v21 = vpop.f32.mrf.mxu0 }
 0x3c5   :  { %941 = vrot.lane.b32.xlu1 %v2526_v43, %s2441_s10 }
 0x3c8   :  { %v779_v22 = vpop.xlane.xlu0 %778 }
 0x3c9   :  { %1017 = vrot.lane.b32.xlu1 %v2545_v47, %s2441_s10  ;;  %v801_v23 = vsub.f32 %v241_v60, %v779_v22 }
 0x3cb   :  { %v809_v29 = vmul.f32 1.442695, %v801_v23 }
 0x3cc   :  { %865 = vrot.lane.b32.xlu0 %v2532_v45, %s2441_s10 }
 0x3cd   :  { %1093 = vrot.lane.b32.xlu1 %v2542_v46, %s2441_s10  ;;  %2373 = vpow2.f32 %v809_v29 }
 0x3ce   :  { %v782_v24 = vpop.xlane.xlu1 %781 }
 0x3cf   :  { %v802_v30 = vsub.f32 %v317_v63, %v782_v24 }
 0x3d0   :  { %1169 = vrot.lane.b32.xlu0 %v2548_v48, %s2441_s10 }
 0x3d1   :  { %1245 = vrot.lane.b32.xlu1 %v2553_v50, %s2441_s10  ;;  %v811_v31 = vmul.f32 1.442695, %v802_v30 }
 0x3d3   :  { %2375 = vpow2.f32 %v811_v31  ;;  %v1473_v31 = vld [vmem:[%s2813_s3] sm:$0xff] }
 0x3da   :  { %v2628_v32 = vpop.eup %2373 }
 0x3db   :  { %v825_v33 = vsel %vm170_vm2, %v2628_v32, 0.0 }
 0x3e0   :  { %v2632_v34 = vpop.eup %2375 }
 0x3e1   :  { %v828_v35 = vsel %vm170_vm2, %v2632_v34, 0.0 }
 0x3ef   :  { %826 = vadd.xlane.f32.xlu0 %v825_v33 }
 0x3f5   :  { %829 = vadd.xlane.f32.xlu1 %v828_v35 }
 0x433   :  { %v785_v36 = vpop.xlane.xlu0 %784 }
 0x434   :  { %v803_v37 = vsub.f32 %v393_v4, %v785_v36 }
 0x436   :  { %v813_v38 = vmul.f32 1.442695, %v803_v37 }
 0x437   :  { %v788_v39 = vpop.xlane.xlu0 %787 }
 0x438   :  { %2377 = vpow2.f32 %v813_v38  ;;  %v804_v43 = vsub.f32 %v469_v7, %v788_v39 }
 0x439   :  { %v794_v40 = vpop.xlane.xlu1 %793 }
 0x43a   :  { %v806_v42 = vsub.f32 %v621_v9, %v794_v40  ;;  %v815_v51 = vmul.f32 1.442695, %v804_v43  ;;  %v1474_v43 = vld [vmem:[%s2813_s3 + $0x8] sm:$0xff] }
 0x43b   :  { %v791_v44 = vpop.xlane.xlu0 %790 }
 0x43c   :  { %v819_v45 = vmul.f32 1.442695, %v806_v42  ;;  %v805_v46 = vsub.f32 %v545_v13, %v791_v44  ;;  %v1475_v44 = vld [vmem:[%s2813_s3 + $0x10] sm:$0xff] }
 0x43d   :  { %v800_v47 = vpop.xlane.xlu1 %799 }
 0x43e   :  { %2379 = vpow2.f32 %v819_v45  ;;  %v817_v48 = vmul.f32 1.442695, %v805_v46  ;;  %v808_v50 = vsub.f32 %v773_v15, %v800_v47  ;;  %v1476_v45 = vld [vmem:[%s2813_s3 + $0x18] sm:$0xff] }
 0x43f   :  { %v797_v53 = vpop.xlane.xlu0 %796 }
 0x440   :  { %2381 = vpow2.f32 %v817_v48  ;;  %v823_v54 = vmul.f32 1.442695, %v808_v50  ;;  %v807_v55 = vsub.f32 %v697_v19, %v797_v53 }
 0x441   :  { %v942_v56 = vpop.permute.xlu1 %941 }
 0x442   :  { %2383 = vpow2.f32 %v823_v54  ;;  %v821_v57 = vmul.f32 1.442695, %v807_v55  ;;  %2259 = vmatpush3.msra.mxu1 %v942_v56 }
 0x443   :  { %2385 = vpow2.f32 %v815_v51  ;;  %v866_v58 = vpop.permute.xlu0 %865  ;;  %2268 = vmatprep.subr.mxu1 %v2435_v41 }
 0x444   :  { %2387 = vpow2.f32 %v821_v57  ;;  %2254 = vmatpush3.msra.mxu0 %v866_v58 }
 0x445   :  { %v2378_v59 = vpop.eup %2377  ;;  %2263 = vmatprep.subr.mxu0 %v2435_v41  ;;  %v1018_v9 = vpop.permute.xlu1 %1017 }
 0x446   :  { %v831_v60 = vsel %vm170_vm2, %v2378_v59, 0.0 }
 0x447   :  { %832 = vadd.xlane.f32.xlu0 %v831_v60  ;;  %v1170_v10 = vpop.permute.xlu0 %1169 }
 0x449   :  { %v1094_v11 = vpop.permute.xlu1 %1093 }
 0x44b   :  { %v2639_v61 = vpop.eup %2379 }
 0x44c   :  { %v840_v62 = vsel %vm170_vm2, %v2639_v61, 0.0 }
 0x44d   :  { %v2382_v63 = vpop.eup %2381  ;;  %841 = vadd.xlane.f32.xlu1 %v840_v62  ;;  %v1246_v13 = vpop.permute.xlu1 %1245 }
 0x44e   :  { %v837_v2 = vsel %vm170_vm2, %v2382_v63, 0.0 }
 0x44f   :  { %v2644_v3 = vpop.eup %2383  ;;  %838 = vadd.xlane.f32.xlu0 %v837_v2 }
 0x450   :  { %v2386_v4 = vpop.eup %2385  ;;  %v846_v5 = vsel %vm170_vm2, %v2644_v3, 0.0 }
 0x451   :  { %v2388_v6 = vpop.eup %2387  ;;  %847 = vadd.xlane.f32.xlu1 %v846_v5  ;;  %v834_v8 = vsel %vm170_vm2, %v2386_v4, 0.0 }
 0x452   :  { %v843_v7 = vsel %vm170_vm2, %v2388_v6, 0.0 }
 0x453   :  { %844 = vadd.xlane.f32.xlu0 %v843_v7  ;;  %v1817_v7 = vsub.s32 3, %v2505_v25 }
 0x455   :  { %835 = vadd.xlane.f32.xlu1 %v834_v8 }
 0x466   :  { %1397 = vrot.lane.b32.xlu1 %v2558_v52, %s2441_s10 }
 0x469   :  { %1321 = vrot.lane.b32.xlu0 %v2550_v49, %s2441_s10 }
 0x478   :  { %v827_v12 = vpop.xlane.xlu0 %826 }
 0x479   :  { %2389 = vrcp.f32 %v827_v12 }
 0x47e   :  { %v830_v14 = vpop.xlane.xlu1 %829 }
 0x47f   :  { %2391 = vrcp.f32 %v830_v14 }
 0x486   :  { %v2390_v15 = vpop.eup %2389 }
 0x487   :  { %v857_v16 = vmul.f32 %v2390_v15, %v2628_v32 }
 0x489   :  { %2256 = vmatmul.mubr.msk.f32.vlgmr.msra.gmra.mxu0 %vm170_vm2, %v857_v16 }
 0x48a   :  { %2264 = vmatpush3.msra.mxu0 %v1018_v9  ;;  %2265 = vmatprep.mubr.msk.f32.mxu0 %vm2436_vm1, %v2435_v41 }
 0x48b   :  { %2273 = vmatprep.subr.mxu0 %v2435_v41 }
 0x48c   :  { %v2392_v49 = vpop.eup %2391 }
 0x48d   :  { %v858_v52 = vmul.f32 %v2392_v49, %v2632_v34 }
 0x48f   :  { %2261 = vmatmul.mubr.msk.f32.vlgmr.msra.gmra.mxu1 %vm170_vm2, %v858_v52 }
 0x490   :  { %2269 = vmatpush3.msra.mxu1 %v1094_v11  ;;  %2270 = vmatprep.mubr.msk.f32.mxu1 %vm2436_vm1, %v2435_v41 }
 0x491   :  { %2278 = vmatprep.subr.mxu1 %v2435_v41 }
 0x4d0   :  { %v833_v17 = vpop.xlane.xlu0 %832 }
 0x4d1   :  { %2393 = vrcp.f32 %v833_v17  ;;  %v1818_v17 = vrot.slane %v2511_v27, %v1817_v7 }
 0x4d6   :  { %v842_v18 = vpop.xlane.xlu1 %841 }
 0x4d8   :  { %v839_v19 = vpop.xlane.xlu0 %838 }
 0x4d9   :  { %2395 = vrcp.f32 %v839_v19 }
 0x4da   :  { %v848_v20 = vpop.xlane.xlu1 %847 }
 0x4dc   :  { %v845_v21 = vpop.xlane.xlu0 %844 }
 0x4dd   :  { %2397 = vrcp.f32 %v845_v21 }
 0x4de   :  { %v2394_v22 = vpop.eup %2393  ;;  %v836_v23 = vpop.xlane.xlu1 %835 }
 0x4df   :  { %2399 = vrcp.f32 %v836_v23  ;;  %v859_v24 = vmul.f32 %v2394_v22, %v2378_v59 }
 0x4e0   :  { %2401 = vrcp.f32 %v842_v18  ;;  %v1322_v32 = vpop.permute.xlu0 %1321 }
 0x4e1   :  { %2266 = vmatmul.mubr.msk.f32.vlgmr.msra.gmra.mxu0 %vm170_vm2, %v859_v24  ;;  %2403 = vrcp.f32 %v848_v20 }
 0x4e2   :  { %2274 = vmatpush3.msra.mxu0 %v1170_v10  ;;  %2275 = vmatprep.mubr.msk.f32.mxu0 %vm2436_vm1, %v2435_v41  ;;  %v1398_v40 = vpop.permute.xlu1 %1397 }
 0x4e3   :  { %2283 = vmatprep.subr.mxu0 %v2435_v41 }
 0x4e6   :  { %v2396_v29 = vpop.eup %2395 }
 0x4e7   :  { %v861_v30 = vmul.f32 %v2396_v29, %v2382_v63 }
 0x4e9   :  { %2276 = vmatmul.mubr.msk.f32.vlgmr.msra.gmra.mxu0 %vm170_vm2, %v861_v30 }
 0x4ea   :  { %v2398_v33 = vpop.eup %2397  ;;  %2284 = vmatpush3.msra.mxu0 %v1322_v32  ;;  %2285 = vmatprep.mubr.msk.f32.mxu0 %vm2436_vm1, %v2435_v41 }
 0x4eb   :  { %v863_v34 = vmul.f32 %v2398_v33, %v2388_v6  ;;  %2293 = vmatprep.subr.mxu0 %v1473_v31 }
 0x4ec   :  { %v2400_v35 = vpop.eup %2399 }
 0x4ed   :  { %2286 = vmatmul.mubr.msk.f32.vlgmr.msra.gmra.mxu0 %vm170_vm2, %v863_v34  ;;  %v860_v36 = vmul.f32 %v2400_v35, %v2386_v4  ;;  %v2402_v37 = vpop.eup %2401 }
 0x4ee   :  { %2294 = vmatpush3.msra.mxu0 %v1473_v31  ;;  %v862_v38 = vmul.f32 %v2402_v37, %v2639_v61  ;;  %v2404_v39 = vpop.eup %2403 }
 0x4ef   :  { %2271 = vmatmul.mubr.msk.f32.vlgmr.msra.gmra.mxu1 %vm170_vm2, %v860_v36  ;;  %v864_v42 = vmul.f32 %v2404_v39, %v2644_v3  ;;  %2303 = vmatprep.subr.mxu0 %v1475_v44 }
 0x4f0   :  { %2279 = vmatpush3.msra.mxu1 %v1246_v13  ;;  %2280 = vmatprep.mubr.msk.f32.mxu1 %vm2436_vm1, %v2435_v41  ;;  %v1823_v13 = vsub.s32 4, %v2505_v25 }
 0x4f1   :  { %2288 = vmatprep.subr.mxu1 %v2435_v41 }
 0x4f2   :  { %v1824_v21 = vrot.slane %v2511_v27, %v1823_v13  ;;  %v1976_v13 = vld [vmem:[%s2812_s2 + $0x48] sm:$0xff] }
 0x4f3   :  { %2281 = vmatmul.mubr.msk.f32.vlgmr.msra.gmra.mxu1 %vm170_vm2, %v862_v38 }
 0x4f4   :  { %2289 = vmatpush3.msra.mxu1 %v1398_v40  ;;  %2290 = vmatprep.mubr.msk.f32.mxu1 %vm2436_vm1, %v2435_v41 }
 0x4f5   :  { %2298 = vmatprep.subr.mxu1 %v1474_v43 }
 0x4f7   :  { %2291 = vmatmul.mubr.msk.f32.vlgmr.msra.gmra.mxu1 %vm170_vm2, %v864_v42 }
 0x4f8   :  { %2299 = vmatpush3.msra.mxu1 %v1474_v43 }
 0x4f9   :  { %2308 = vmatprep.subr.mxu1 %v1476_v45 }
 0x549   :  { %v937_v41 = vpop.f32.mrf.mxu0 }
 0x54a   :  { %2295 = vmatprep.mubr.msk.f32.mxu0 %vm170_vm2, %v937_v41  ;;  %v2125_v41 = vld [vmem:[%s2811_s1 + $0x38] sm:$0xff] }
 0x54b   :  { %v2257_v46 = vpop.f32.mrf.mxu0 }
 0x54c   :  { %v2124_v46 = vld [vmem:[%s2811_s1 + $0x30] sm:$0xff] }
 0x54f   :  { %v1013_v47 = vpop.f32.mrf.mxu1 }
 0x550   :  { %2296 = vmatmul.mubr.msk.f32.vlgmr.msra.gmra.mxu0 %vm170_vm2, %v1013_v47  ;;  %v2123_v47 = vld [vmem:[%s2811_s1 + $0x28] sm:$0xff] }
 0x551   :  { %v2262_v48 = vpop.f32.mrf.mxu1  ;;  %2304 = vmatpush3.msra.mxu0 %v1475_v44 }
 0x552   :  { %2313 = vmatprep.subr.mxu0 %v2125_v41  ;;  %v2122_v48 = vld [vmem:[%s2811_s1 + $0x20] sm:$0xff]  ;;  %s2077_s1 = sshll.u32 %s2442_s30, 4  ;;  %s2078_s1 = int_to_ptr.vmem [resolvable:$true] %s2077_s1 }
 0x553   :  { %p2418_p1 = scmp.lt.s32.totalorder %s2078_s1, %s2078_s1 }
 0x5a1   :  { %v1089_v50 = vpop.f32.mrf.mxu0 }
 0x5a2   :  { %2300 = vmatprep.mubr.msk.f32.mxu1 %vm170_vm2, %v1089_v50  ;;  %v1982_v50 = vld [vmem:[%s2812_s2 + $0x78] sm:$0xff] }
 0x5a3   :  { %v2267_v51 = vpop.f32.mrf.mxu0 }
 0x5a4   :  { %v1981_v51 = vld [vmem:[%s2812_s2 + $0x70] sm:$0xff] }
 0x5a9   :  { %v1241_v53 = vpop.f32.mrf.mxu0 }
 0x5aa   :  { %2305 = vmatprep.mubr.msk.f32.mxu0 %vm170_vm2, %v1241_v53  ;;  %v1980_v53 = vld [vmem:[%s2812_s2 + $0x68] sm:$0xff] }
 0x5ab   :  { %v2277_v54 = vpop.f32.mrf.mxu0 }
 0x5ad   :  { %v1393_v55 = vpop.f32.mrf.mxu0 }
 0x5af   :  { %v1165_v56 = vpop.f32.mrf.mxu1  ;;  %v2287_v57 = vpop.f32.mrf.mxu0 }
 0x5b0   :  { %2301 = vmatmul.mubr.msk.f32.vlgmr.msra.gmra.mxu1 %vm170_vm2, %v1165_v56 }
 0x5b1   :  { %v2272_v58 = vpop.f32.mrf.mxu1  ;;  %2310 = vmatprep.mubr.msk.f32.mxu1 %vm170_vm2, %v1393_v55  ;;  %2309 = vmatpush3.msra.mxu1 %v1476_v45 }
 0x5b2   :  { %2324 = vmatprep.subr.mxu1 %v1982_v50 }
 0x5b3   :  { %v1317_v59 = vpop.f32.mrf.mxu1 }
 0x5b4   :  { %2306 = vmatmul.mubr.msk.f32.vlgmr.msra.gmra.mxu0 %vm170_vm2, %v1317_v59 }
 0x5b5   :  { %v2282_v60 = vpop.f32.mrf.mxu1  ;;  %2314 = vmatpush3.msra.mxu0 %v2125_v41 }
 0x5b6   :  { %2315 = vmatprep.subr.mxu0 %v2124_v46  ;;  %v1857_v60 = vsub.s32 5, %v2505_v25 }
 0x5b7   :  { %v1469_v61 = vpop.f32.mrf.mxu1  ;;  %2316 = vmatpush3.msra.mxu0 %v2124_v46 }
 0x5b8   :  { %2311 = vmatmul.mubr.msk.f32.vlgmr.msra.gmra.mxu1 %vm170_vm2, %v1469_v61  ;;  %2317 = vmatprep.subr.mxu0 %v2123_v47  ;;  %v1863_v61 = vsub.s32 6, %v2505_v25 }
 0x5b9   :  { %v2292_v62 = vpop.f32.mrf.mxu1  ;;  %2318 = vmatpush3.msra.mxu0 %v2123_v47  ;;  %2325 = vmatpush3.msra.mxu1 %v1982_v50 }
 0x5ba   :  { %2319 = vmatprep.subr.mxu0 %v2122_v48  ;;  %2326 = vmatprep.subr.mxu1 %v1981_v51  ;;  %v1858_v62 = vrot.slane %v2511_v27, %v1857_v60 }
 0x5bb   :  { %2320 = vmatpush3.msra.mxu0 %v2122_v48  ;;  %2327 = vmatpush3.msra.mxu1 %v1981_v51 }
 0x5bc   :  { %2328 = vmatprep.subr.mxu1 %v1980_v53 }
 0x5bd   :  { %2329 = vmatpush3.msra.mxu1 %v1980_v53 }
 0x610   :  { %v2297_v63 = vpop.f32.mrf.mxu0 }
 0x611   :  { %v1808_v8 = vsel %vm25_vm0, %v2297_v63, 0.0 }
 0x612   :  { %v1549_v3 = vpop.f32.mrf.mxu0 }
 0x613   :  { %v1801_v14 = vsel %vm25_vm0, %v1549_v3, 0.0  ;;  %v1864_v3 = vrot.slane %v2511_v27, %v1863_v61 }
 0x670   :  { %v2302_v2 = vpop.f32.mrf.mxu1 }
 0x671   :  { %v1809_v5 = vsel %vm25_vm0, %v2302_v2, 0.0 }
 0x672   :  { %v1630_v4 = vpop.f32.mrf.mxu1  ;;  %v1810_v11 = vadd.f32 %v1809_v5, %v1808_v8 }
 0x673   :  { %v1802_v9 = vsel %vm25_vm0, %v1630_v4, 0.0 }
 0x674   :  { %v2307_v6 = vpop.f32.mrf.mxu0  ;;  %v1803_v16 = vadd.f32 %v1802_v9, %v1801_v14  ;;  %v1975_v14 = vld [vmem:[%s2812_s2 + $0x40] sm:$0xff] }
 0x675   :  { %v1811_v10 = vsel %vm25_vm0, %v2307_v6, 0.0 }
 0x676   :  { %v1711_v12 = vpop.f32.mrf.mxu0  ;;  %v1812_v49 = vadd.f32 %v1811_v10, %v1810_v11  ;;  %v1979_v10 = vld [vmem:[%s2812_s2 + $0x60] sm:$0xff]  ;;  %v1978_v11 = vld [vmem:[%s2812_s2 + $0x58] sm:$0xff] }
 0x677   :  { %v1804_v15 = vsel %vm25_vm0, %v1711_v12, 0.0  ;;  %2330 = vmatprep.subr.mxu1 %v1979_v10  ;;  %v1977_v12 = vld [vmem:[%s2812_s2 + $0x50] sm:$0xff] }
 0x678   :  { %v2312_v52 = vpop.f32.mrf.mxu1  ;;  %v1805_v19 = vadd.f32 %v1804_v15, %v1803_v16  ;;  %2331 = vmatpush3.msra.mxu1 %v1979_v10  ;;  %v1974_v15 = vld [vmem:[%s2812_s2 + $0x38] sm:$0xff]  ;;  %v1973_v16 = vld [vmem:[%s2812_s2 + $0x30] sm:$0xff] }
 0x679   :  { %v1813_v18 = vsel %vm25_vm0, %v2312_v52, 0.0  ;;  %2332 = vmatprep.subr.mxu1 %v1978_v11  ;;  %v1971_v52 = vld [vmem:[%s2812_s2 + $0x20] sm:$0xff] }
 0x67a   :  { %v1814_v20 = vadd.f32 %v1813_v18, %v1812_v49  ;;  %v1792_v22 = vpop.f32.mrf.mxu1  ;;  %2333 = vmatpush3.msra.mxu1 %v1978_v11  ;;  %v1972_v49 = vld [vmem:[%s2812_s2 + $0x28] sm:$0xff]  ;;  %v1969_v18 = vld [vmem:[%s2812_s2 + $0x10] sm:$0xff] }
 0x67b   :  { %v1806_v23 = vsel %vm25_vm0, %v1792_v22, 0.0  ;;  %2334 = vmatprep.subr.mxu1 %v1977_v12 }
 0x67c   :  { %v1820_v24 = vadd.f32 %v1818_v17, %v1814_v20  ;;  %v1807_v29 = vadd.f32 %v1806_v23, %v1805_v19  ;;  %2335 = vmatpush3.msra.mxu1 %v1977_v12  ;;  %v1968_v19 = vld [vmem:[%s2812_s2 + $0x8] sm:$0xff]  ;;  %v1967_v20 = vld [vmem:[%s2812_s2] sm:$0xff] }
 0x67d   :  { %2336 = vmatprep.subr.mxu1 %v1976_v13 }
 0x67e   :  { %v1826_v30 = vmul.f32 %v1824_v21, %v1820_v24  ;;  %v1819_v31 = vadd.f32 %v1818_v17, %v1807_v29  ;;  %2337 = vmatpush3.msra.mxu1 %v1976_v13  ;;  %v1970_v17 = vld [vmem:[%s2812_s2 + $0x18] sm:$0xff] }
 0x67f   :  { %2338 = vmatprep.subr.mxu1 %v1975_v14 }
 0x680   :  { %v1825_v32 = vmul.f32 %v1824_v21, %v1819_v31  ;;  %v2715_v33 = vadd.f32 %v1826_v30, %v2483_v1  ;;  %2339 = vmatpush3.msra.mxu1 %v1975_v14  ;;  %v1874_v21 = vsub.s32 7, %v2505_v25 }
 0x681   :  { %2340 = vmatprep.subr.mxu1 %v1974_v15 }
 0x682   :  { %v1832_v34 = vsel %vm25_vm0, %v2715_v33, 0.0  ;;  %v2720_v35 = vadd.f32 %v1825_v32, %v2478_v0  ;;  %2341 = vmatpush3.msra.mxu1 %v1974_v15  ;;  %v1875_v22 = vrot.slane %v2511_v27, %v1874_v21  ;;  %v24_v27 = vld [vmem:[%s2814_s4 + $0x8] sm:$0xff]  ;;  %s2413_s4 = scalar_lea.vmem %s2078_s1, 256 }
 0x683   :  { %1833 = vadd.xlane.f32.xlu1 %v1832_v34  ;;  %2342 = vmatprep.subr.mxu1 %v1973_v16  ;;  %p2414_p0 = scmp.ne.s32.totalorder %s2078_s1, %s2413_s4  ;;  %p2419_p2 = scmp.lt.s32.totalorder %s2413_s4, %s2413_s4 }
 0x684   :  { %v1829_v36 = vsel %vm25_vm0, %v2720_v35, 0.0  ;;  %2343 = vmatpush3.msra.mxu1 %v1973_v16 }
 0x685   :  { %1830 = vadd.xlane.f32.xlu0 %v1829_v36  ;;  %2344 = vmatprep.subr.mxu1 %v1972_v49  ;;  %p2420_p3 = por %p2419_p2, %p2418_p1 }
 0x686   :  { %2345 = vmatpush3.msra.mxu1 %v1972_v49 }
 0x687   :  { %2346 = vmatprep.subr.mxu1 %v1971_v52  ;;  %p2421_p4 = pnand %p2420_p3, %p2414_p0 }
 0x688   :  { %2347 = vmatpush3.msra.mxu1 %v1971_v52 }
 0x689   :  { %2348 = vmatprep.subr.mxu1 %v1970_v17 }
 0x68a   :  { %2349 = vmatpush3.msra.mxu1 %v1970_v17 }
 0x68b   :  { %2350 = vmatprep.subr.mxu1 %v1969_v18 }
 0x68c   :  { %2351 = vmatpush3.msra.mxu1 %v1969_v18 }
 0x68d   :  { %2352 = vmatprep.subr.mxu1 %v1968_v19 }
 0x68e   :  { %2353 = vmatpush3.msra.mxu1 %v1968_v19 }
 0x68f   :  { %2354 = vmatprep.subr.mxu1 %v1967_v20 }
 0x690   :  { %2355 = vmatpush3.msra.mxu1 %v1967_v20 }
 0x70c   :  { %v1834_v37 = vpop.xlane.xlu1 %1833 }
 0x70d   :  { %v1836_v38 = vmul.f32 0.03125, %v1834_v37 }
 0x70e   :  { %v1831_v39 = vpop.xlane.xlu0 %1830 }
 0x70f   :  { %v1835_v40 = vmul.f32 0.03125, %v1831_v39  ;;  %v1838_v42 = vsub.f32 %v2715_v33, %v1836_v38 }
 0x711   :  { %v1837_v1 = vsub.f32 %v2720_v35, %v1835_v40  ;;  %v1840_v45 = vmul.f32 %v1838_v42, %v1838_v42 }
 0x713   :  { %v1839_v43 = vmul.f32 %v1837_v1, %v1837_v1  ;;  %v1844_v0 = vsel %vm25_vm0, %v1840_v45, 0.0 }
 0x715   :  { %v1841_v44 = vsel %vm25_vm0, %v1839_v43, 0.0  ;;  %v1986_v43 = vrot.slane %v24_v27, %v55_v26 }
 0x716   :  { %1842 = vadd.xlane.f32.xlu0 %v1841_v44  ;;  %v2065_v44 = vrot.slane %v24_v27, %v61_v28 }
 0x71a   :  { %1845 = vadd.xlane.f32.xlu0 %v1844_v0 }
 0x79f   :  { %v1843_v54 = vpop.xlane.xlu0 %1842 }
 0x7a0   :  { %v1847_v55 = vmul.f32 0.03125, %v1843_v54 }
 0x7a2   :  { %v1849_v56 = vadd.f32 1e-05, %v1847_v55 }
 0x7a3   :  { %v1846_v57 = vpop.xlane.xlu0 %1845 }
 0x7a4   :  { %2405 = vrsqrt.f32 %v1849_v56  ;;  %v1848_v58 = vmul.f32 0.03125, %v1846_v57 }
 0x7a6   :  { %v1850_v59 = vadd.f32 1e-05, %v1848_v58 }
 0x7a8   :  { %2407 = vrsqrt.f32 %v1850_v59 }
 0x7b1   :  { %v2406_v63 = vpop.eup %2405 }
 0x7b2   :  { %v1853_v2 = vmul.f32 %v2406_v63, %v1837_v1 }
 0x7b4   :  { %v1859_v4 = vmul.f32 %v1858_v62, %v1853_v2 }
 0x7b5   :  { %v2408_v5 = vpop.eup %2407 }
 0x7b6   :  { %v1854_v6 = vmul.f32 %v2408_v5, %v1838_v42  ;;  %v1865_v7 = vadd.f32 %v1864_v3, %v1859_v4 }
 0x7b8   :  { %v1860_v8 = vmul.f32 %v1858_v62, %v1854_v6  ;;  %2321 = vmatprep.mubr.msk.f32.mxu0 %vm25_vm0, %v1865_v7 }
 0x7ba   :  { %v1866_v9 = vadd.f32 %v1864_v3, %v1860_v8 }
 0x7bc   :  { %2322 = vmatmul.mubr.msk.f32.vlgmr.msra.gmra.mxu0 %vm25_vm0, %v1866_v9 }
 0x87c   :  { %v2323_v23 = vpop.f32.mrf.mxu0 }
 0x87d   :  { %v1954_v24 = vadd.f32 %v2323_v23, %v1875_v22 }
 0x87e   :  { %v1948_v29 = vpop.f32.mrf.mxu0 }
 0x87f   :  { %v1960_v30 = vmul.f32 0.70710677, %v1954_v24  ;;  %v1949_v31 = vadd.f32 %v1948_v29, %v1875_v22  ;;  %v1958_v40 = vmul.f32 0.5, %v1954_v24 }
 0x881   :  { %2409 = verf.f32 %v1960_v30  ;;  %v1959_v32 = vmul.f32 0.70710677, %v1949_v31  ;;  %v1957_v38 = vmul.f32 0.5, %v1949_v31 }
 0x883   :  { %2411 = verf.f32 %v1959_v32 }
 0x88e   :  { %v2410_v34 = vpop.eup %2409 }
 0x88f   :  { %v1964_v37 = vadd.f32 1.0, %v2410_v34 }
 0x890   :  { %v2412_v36 = vpop.eup %2411 }
 0x891   :  { %v1963_v39 = vadd.f32 1.0, %v2412_v36  ;;  %v1966_v1 = vmul.f32 %v1964_v37, %v1958_v40 }
 0x893   :  { %v1965_v42 = vmul.f32 %v1963_v39, %v1957_v38 }
 0x895   :  { %2356 = vmatprep.mubr.f32.mxu1 %v1965_v42 }
 0x896   :  { %2357 = vmatmul.mubr.f32.vlgmr.msra.gmra.mxu1 %v1966_v1 }
 0x956   :  { %v2358_v45 = vpop.f32.mrf.mxu1 }
 0x957   :  { %v2059_v0 = vadd.f32 %v2358_v45, %v1986_v43 }
 0x958   :  { %v2053_v41 = vpop.f32.mrf.mxu1 }
 0x959   :  { %v2067_v46 = vmul.f32 %v2065_v44, %v2059_v0  ;;  %v2054_v47 = vadd.f32 %v2053_v41, %v1986_v43 }
 0x95b   :  { %v2069_v48 = vadd.f32 %v2067_v46, %v2715_v33  ;;  %v2066_v50 = vmul.f32 %v2065_v44, %v2054_v47 }
 0x95d   :  { %2071 = vst.msk [vmem:[#allocation2 + $0x8] sm:$0xff] %vm25_vm0, %v2069_v48  ;;  %v2068_v51 = vadd.f32 %v2066_v50, %v2720_v35 }
 0x95f   :  { %2070 = vst.msk [vmem:[#allocation2] sm:$0xff] %vm25_vm0, %v2068_v51 }
 0x960   :  { %2424 = shalt.err (!%p2421_p4)
}
 0x961   :  { %s2443_s6 = smov 128   ;;  %s2444_s7 = smov 8  }
 0x962   :  { %2083 = dma.vmem_to_hbm [thread:$0]  %s2078_s1, 256, %s2815_s5, [#allocation3], %s2443_s6, %s2443_s6, %s2444_s7  }
 0x963   :  { %2433 = dma.done.wait [#allocation3], 256  }
 0x964   :  { %2434 = vsyncadd [#allocation3], 4294967040 }
 0x965   :  { %2087 = vsyncpa [#allocation3], 1 }

</bundles_post_ra>
